<compile_context>
chip_gen: v6e
topology: v6e:2x2x1
jax: 0.10.0
libtpu: 0.0.40
codegen_flags: <defaults>
</compile_context>

<pallas_src>
import jax
import jax.numpy as jnp
import numpy as np
from jax.experimental import pallas as pl
from jax.experimental.pallas import tpu as pltpu

# Hard-concrete / stretched-sigmoid constants from the module.
ZETA = 1.1
GAMMA = -0.1
BETA = 2.0 / 3.0
INV_BETA = 1.0 / BETA

LANE = 128
SUBLANE = 8


def _round_up(x, m):
    return (x + m - 1) // m * m


def linear_dirac_delta_kernel(x_ref, theta_ref, logalpha_ref, u_ref, bias_ref,
                              out_ref, theta_scr):
    """Fused hot path (training-mode semantics, module default):
         s     = sigmoid((log(u) - log1p(-u) + logalpha) * (1/beta))   (S,p,q)
         z     = clamp((zeta-gamma)*s + gamma, 0, 1)                    (S,p,q)
         Theta = theta * mean_S(z)        -> cached in VMEM scratch     (p,q)
         out   = x_tile @ Theta + bias                                  (tN,q)
    """
    # Gate/Theta is independent of the x tile: compute it once per outer chunk
    # (== once per TensorCore under megacore sharding) and reuse it for every
    # inner N tile.  Inner axis is "arbitrary", so this init pattern is safe.
    @pl.when(pl.program_id(1) == 0)
    def _():
        u = u_ref[...]                                         # (S, p, q) f32
        s_samples = u.shape[0]
        # log(u/(1-u)) as log(u) - log1p(-u): no f32 divide on the VPU;
        # the '/beta' becomes a constant multiply.
        logits = (jnp.log(u) - jnp.log1p(-u)
                  + logalpha_ref[...][None, :, :]) * INV_BETA
        s = jax.nn.sigmoid(logits)                             # exp/recip -> EUP
        z = jnp.clip((ZETA - GAMMA) * s + GAMMA, 0.0, 1.0)
        # S is the leading axis: the reduction is plain vreg-wise VPU adds
        # (no XLU cross-lane reduce); finish with one multiply by 1/S.
        gate = jnp.sum(z, axis=0) * (1.0 / s_samples)          # (p, q)
        theta_scr[...] = theta_ref[...] * gate                 # Theta cached

    out_ref[...] = (jnp.dot(x_ref[...], theta_scr[...],
                            preferred_element_type=jnp.float32)
                    + bias_ref[...])                           # (1,q) broadcasts


def linear_dirac_delta(x, theta, logalpha, u, bias, *, n_tile=8):
    N, p = x.shape
    q = theta.shape[1]
    S = u.shape[0]

    # Lane-dense / aligned padding: q -> mult. of 128, p -> mult. of 8,
    # N -> mult. of n_tile.  Padded theta/bias entries are zero so padded
    # output columns/rows carry no signal and are sliced off below; u is
    # padded with 0.5 to keep the gate math finite.
    qp = _round_up(q, LANE)
    pp = _round_up(p, SUBLANE)
    n_pad = _round_up(N, n_tile)

    x_p = jnp.zeros((n_pad, pp), jnp.float32).at[:N, :p].set(x)
    theta_p = jnp.zeros((pp, qp), jnp.float32).at[:p, :q].set(theta)
    logalpha_p = jnp.zeros((pp, qp), jnp.float32).at[:p, :q].set(logalpha)
    u_p = jnp.full((S, pp, qp), 0.5, jnp.float32).at[:, :p, :q].set(u)
    bias_p = jnp.zeros((1, qp), jnp.float32).at[0, :q].set(bias)

    n_tiles = n_pad // n_tile
    n_outer = 2 if (n_tiles >= 2 and n_tiles % 2 == 0) else 1
    n_inner = n_tiles // n_outer

    out = pl.pallas_call(
        linear_dirac_delta_kernel,
        out_shape=jax.ShapeDtypeStruct((n_pad, qp), jnp.float32),
        grid=(n_outer, n_inner),
        in_specs=[
            pl.BlockSpec((n_tile, pp), lambda o, i: (o * n_inner + i, 0)),
            pl.BlockSpec((pp, qp), lambda o, i: (0, 0)),
            pl.BlockSpec((pp, qp), lambda o, i: (0, 0)),
            pl.BlockSpec((S, pp, qp), lambda o, i: (0, 0, 0)),
            pl.BlockSpec((1, qp), lambda o, i: (0, 0)),
        ],
        out_specs=pl.BlockSpec((n_tile, qp), lambda o, i: (o * n_inner + i, 0)),
        scratch_shapes=[pltpu.VMEM((pp, qp), jnp.float32)],
        compiler_params=pltpu.CompilerParams(
            # Outer axis "parallel" -> shards across v7x's 2 TCs (neutral on
            # v5e/v6e); inner axis "arbitrary" so the Theta scratch is
            # initialized at inner==0 on every core.
            dimension_semantics=("parallel", "arbitrary")),
    )(x_p, theta_p, logalpha_p, u_p, bias_p)
    return out[:N, :q]


def reference(x, theta, logalpha, u, bias):
    s = jax.nn.sigmoid((jnp.log(u / (1.0 - u)) + logalpha[None]) / BETA)
    z = jnp.clip((ZETA - GAMMA) * s + GAMMA, 0.0, 1.0)
    Theta = theta * z.mean(axis=0)
    return x @ Theta + bias


if __name__ == "__main__":
    # Small, module-consistent shapes: batch N=32, p=16 input features,
    # q=32 outputs, S=10 hard-concrete samples.
    N, P, Q, S = 32, 16, 32, 10

    key = jax.random.PRNGKey(0)
    k_theta, k_u, k_x = jax.random.split(key, 3)

    # __init__-consistent params: theta ~ U(-1,1) (p,q), bias = ones(q),
    # logalpha = ones(p,q).
    theta = jax.random.uniform(k_theta, (P, Q), jnp.float32, minval=-1.0, maxval=1.0)
    bias = jnp.ones((Q,), jnp.float32)
    logalpha = jnp.ones((P, Q), jnp.float32)

    # u ~ Uniform(0,1) of shape (10, p, q), drawn deterministically here and
    # kept strictly inside (0,1) so log(u/(1-u)) stays finite.
    u = jax.random.uniform(k_u, (S, P, Q), jnp.float32,
                           minval=1e-6, maxval=1.0 - 1e-6)

    x = jax.random.normal(k_x, (N, P), jnp.float32)

    out = jax.block_until_ready(linear_dirac_delta(x, theta, logalpha, u, bias))
    ref = reference(x, theta, logalpha, u, bias)
    np.testing.assert_allclose(np.asarray(out), np.asarray(ref),
                               rtol=1e-5, atol=1e-5)

    print("KERNEL_OK")
</pallas_src>

<mosaic_0001>
module attributes {stable_mosaic.version = 11 : i64} {
  func.func @linear_dirac_delta_kernel(%arg0: i32, %arg1: i32, %arg2: memref<8x16xf32, #tpu.memory_space<vmem>>, %arg3: memref<16x128xf32, #tpu.memory_space<vmem>>, %arg4: memref<16x128xf32, #tpu.memory_space<vmem>>, %arg5: memref<10x16x128xf32, #tpu.memory_space<vmem>>, %arg6: memref<1x128xf32, #tpu.memory_space<vmem>>, %arg7: memref<8x128xf32, #tpu.memory_space<vmem>>, %arg8: memref<16x128xf32, #tpu.memory_space<vmem>>) attributes {dimension_semantics = [#tpu.dimension_semantics<parallel>, #tpu.dimension_semantics<arbitrary>], iteration_bounds = array<i64: 2, 2>, scalar_prefetch = 0 : i64, scratch_operands = 1 : i64, tpu.core_type = #tpu.core_type<tc>, window_params = [{transform_indices = @transform_0, window_bounds = array<i64: 8, 16>}, {pipeline_mode = #tpu.pipeline_mode<synchronous>, transform_indices = @transform_1, window_bounds = array<i64: 16, 128>}, {pipeline_mode = #tpu.pipeline_mode<synchronous>, transform_indices = @transform_2, window_bounds = array<i64: 16, 128>}, {pipeline_mode = #tpu.pipeline_mode<synchronous>, transform_indices = @transform_3, window_bounds = array<i64: 10, 16, 128>}, {pipeline_mode = #tpu.pipeline_mode<synchronous>, transform_indices = @transform_4, window_bounds = array<i64: 1, 128>}, {transform_indices = @transform_5, window_bounds = array<i64: 8, 128>}]} {
    %c0_i32 = arith.constant 0 : i32
    %0 = arith.cmpi eq, %arg1, %c0_i32 : i32
    %1 = arith.extui %0 : i1 to i32
    %c0_i32_0 = arith.constant 0 : i32
    %2 = arith.cmpi ne, %1, %c0_i32_0 : i32
    scf.if %2 {
      %c0_8 = arith.constant 0 : index
      %c0_9 = arith.constant 0 : index
      %c0_10 = arith.constant 0 : index
      %10 = vector.load %arg5[%c0_8, %c0_9, %c0_10] : memref<10x16x128xf32, #tpu.memory_space<vmem>>, vector<10x16x128xf32>
      %11 = math.log %10 : vector<10x16x128xf32>
      %cst_11 = arith.constant 0.000000e+00 : f32
      %12 = vector.broadcast %cst_11 : f32 to vector<10x16x128xf32>
      %13 = arith.subf %12, %10 : vector<10x16x128xf32>
      %14 = math.log1p %13 : vector<10x16x128xf32>
      %15 = arith.subf %11, %14 : vector<10x16x128xf32>
      %c0_12 = arith.constant 0 : index
      %c0_13 = arith.constant 0 : index
      %16 = vector.load %arg4[%c0_12, %c0_13] : memref<16x128xf32, #tpu.memory_space<vmem>>, vector<16x128xf32>
      %17 = vector.shape_cast %16 : vector<16x128xf32> to vector<1x16x128xf32>
      %18 = vector.broadcast %17 : vector<1x16x128xf32> to vector<10x16x128xf32>
      %19 = arith.addf %15, %18 : vector<10x16x128xf32>
      %cst_14 = arith.constant 1.500000e+00 : f32
      %20 = vector.broadcast %cst_14 : f32 to vector<10x16x128xf32>
      %21 = arith.mulf %19, %20 : vector<10x16x128xf32>
      %22 = arith.negf %21 : vector<10x16x128xf32>
      %23 = math.exp %22 : vector<10x16x128xf32>
      %cst_15 = arith.constant 1.000000e+00 : f32
      %24 = vector.broadcast %cst_15 : f32 to vector<10x16x128xf32>
      %25 = arith.addf %24, %23 : vector<10x16x128xf32>
      %26 = arith.divf %24, %25 : vector<10x16x128xf32>
      %cst_16 = arith.constant 1.200000e+00 : f32
      %27 = vector.broadcast %cst_16 : f32 to vector<10x16x128xf32>
      %28 = arith.mulf %27, %26 : vector<10x16x128xf32>
      %cst_17 = arith.constant -1.000000e-01 : f32
      %29 = vector.broadcast %cst_17 : f32 to vector<10x16x128xf32>
      %30 = arith.addf %28, %29 : vector<10x16x128xf32>
      %cst_18 = arith.constant 0.000000e+00 : f32
      %cst_19 = arith.constant 1.000000e+00 : f32
      %31 = vector.broadcast %cst_18 : f32 to vector<10x16x128xf32>
      %32 = arith.maximumf %31, %30 : vector<10x16x128xf32>
      %33 = vector.broadcast %cst_19 : f32 to vector<10x16x128xf32>
      %34 = arith.minimumf %33, %32 : vector<10x16x128xf32>
      %cst_20 = arith.constant dense<0.000000e+00> : vector<16x128xf32>
      %35 = vector.multi_reduction <add>, %34, %cst_20 [0] : vector<10x16x128xf32> to vector<16x128xf32>
      %cst_21 = arith.constant 1.000000e-01 : f32
      %36 = vector.broadcast %cst_21 : f32 to vector<16x128xf32>
      %37 = arith.mulf %35, %36 : vector<16x128xf32>
      %c0_22 = arith.constant 0 : index
      %c0_23 = arith.constant 0 : index
      %38 = vector.load %arg3[%c0_22, %c0_23] : memref<16x128xf32, #tpu.memory_space<vmem>>, vector<16x128xf32>
      %39 = arith.mulf %38, %37 : vector<16x128xf32>
      %c0_24 = arith.constant 0 : index
      %c0_25 = arith.constant 0 : index
      %40 = vector.load %arg8[%c0_24, %c0_25] : memref<16x128xf32, #tpu.memory_space<vmem>>, vector<16x128xf32>
      tpu.vector_store %arg8[%c0_24, %c0_25], %39 {strides = array<i32>} : memref<16x128xf32, #tpu.memory_space<vmem>>, vector<16x128xf32>,
    } else {
    }
    %c0 = arith.constant 0 : index
    %c0_1 = arith.constant 0 : index
    %3 = vector.load %arg2[%c0, %c0_1] : memref<8x16xf32, #tpu.memory_space<vmem>>, vector<8x16xf32>
    %c0_2 = arith.constant 0 : index
    %c0_3 = arith.constant 0 : index
    %4 = vector.load %arg8[%c0_2, %c0_3] : memref<16x128xf32, #tpu.memory_space<vmem>>, vector<16x128xf32>
    %cst = arith.constant dense<0.000000e+00> : vector<8x128xf32>
    %5 = tpu.matmul %3, %4, %cst {dimension_numbers = #tpu.dot_dimension_numbers<[1], [0], [0], [1], [0, 0, 1, 1], [], []>} : vector<8x16xf32>, vector<16x128xf32>, vector<8x128xf32> -> vector<8x128xf32>
    %c0_4 = arith.constant 0 : index
    %c0_5 = arith.constant 0 : index
    %6 = vector.load %arg6[%c0_4, %c0_5] : memref<1x128xf32, #tpu.memory_space<vmem>>, vector<1x128xf32>
    %7 = vector.broadcast %6 : vector<1x128xf32> to vector<8x128xf32>
    %8 = arith.addf %5, %7 : vector<8x128xf32>
    %c0_6 = arith.constant 0 : index
    %c0_7 = arith.constant 0 : index
    %9 = vector.load %arg7[%c0_6, %c0_7] : memref<8x128xf32, #tpu.memory_space<vmem>>, vector<8x128xf32>
    tpu.vector_store %arg7[%c0_6, %c0_7], %8 {strides = array<i32>} : memref<8x128xf32, #tpu.memory_space<vmem>>, vector<8x128xf32>,
    return
  }
  func.func @transform_0(%arg0: i32, %arg1: i32) -> (i32, i32) {
    %c2_i32 = arith.constant 2 : i32
    %0 = arith.muli %arg0, %c2_i32 : i32
    %1 = arith.addi %0, %arg1 : i32
    %c0_i32 = arith.constant 0 : i32
    %c0_i32_0 = arith.constant 0 : i32
    return %1, %c0_i32 : i32, i32
  }
  func.func @transform_1(%arg0: i32, %arg1: i32) -> (i32, i32) {
    %c0_i32 = arith.constant 0 : i32
    %c0_i32_0 = arith.constant 0 : i32
    %c0_i32_1 = arith.constant 0 : i32
    return %c0_i32, %c0_i32_0 : i32, i32
  }
  func.func @transform_2(%arg0: i32, %arg1: i32) -> (i32, i32) {
    %c0_i32 = arith.constant 0 : i32
    %c0_i32_0 = arith.constant 0 : i32
    %c0_i32_1 = arith.constant 0 : i32
    return %c0_i32, %c0_i32_0 : i32, i32
  }
  func.func @transform_3(%arg0: i32, %arg1: i32) -> (i32, i32, i32) {
    %c0_i32 = arith.constant 0 : i32
    %c0_i32_0 = arith.constant 0 : i32
    %c0_i32_1 = arith.constant 0 : i32
    %c0_i32_2 = arith.constant 0 : i32
    return %c0_i32, %c0_i32_0, %c0_i32_1 : i32, i32, i32
  }
  func.func @transform_4(%arg0: i32, %arg1: i32) -> (i32, i32) {
    %c0_i32 = arith.constant 0 : i32
    %c0_i32_0 = arith.constant 0 : i32
    %c0_i32_1 = arith.constant 0 : i32
    return %c0_i32, %c0_i32_0 : i32, i32
  }
  func.func @transform_5(%arg0: i32, %arg1: i32) -> (i32, i32) {
    %c2_i32 = arith.constant 2 : i32
    %0 = arith.muli %arg0, %c2_i32 : i32
    %1 = arith.addi %0, %arg1 : i32
    %c0_i32 = arith.constant 0 : i32
    %c0_i32_0 = arith.constant 0 : i32
    return %1, %c0_i32 : i32, i32
  }
}

</mosaic_0001>

<bundles_post_ra>
// kernel: tpu_custom_call.1
= control target key start
LH: loop header
LB: loop body
LE: loop exit
PB: predicated region body
PF: predicated region fallthrough
CT: control target
= control target key end

     0   :  { %10 = vsyncpa [#allocation4], 0  ;;  %s2110_s0 = inlined_call_operand.vmem [shape: f32[32,16], index: 0, kind: input, shape index: {}]   ;;  %s2111_s1 = inlined_call_operand.vmem [shape: f32[16,128], index: 1, kind: input, shape index: {}]   ;;  %s2112_s2 = inlined_call_operand.vmem [shape: f32[16,128], index: 2, kind: input, shape index: {}]   ;;  %s2113_s3 = inlined_call_operand.hbm [shape: f32[10,16,128], index: 3, kind: input, shape index: {}]   ;;  %s2114_s4 = inlined_call_operand.vmem [shape: f32[1,128], index: 4, kind: input, shape index: {}]   ;;  %s2115_s5 = inlined_call_operand.hbm [shape: f32[32,128], index: 5, kind: output, shape index: {}]  }
   0x1   :  { %11 = vsyncpa [#allocation5], 0 }
   0x2   :  { %13 = vsyncpa [#allocation5 + $0x1], 0  ;;  %s1462_s18 = smov 0   ;;  %s1464_s19 = smov 0  }
   0x3   :  { %s1466_s20 = smov 0   ;;  %s1468_s21 = smov 0  }
   0x4   :  { %s1470_s22 = smov 0   ;;  %s1472_s23 = smov 0  }
   0x5   :  { %s1474_s24 = smov 0   ;;  %s1476_s25 = smov 0  }
   0x6 LB: > { %s1004_s26 = sadd.s32 4294967295, %s1424_s25   ;;  %s1005_s27 = sadd.s32 4294967294, %s1424_s25   ;;  %s1424_s25 = sphi %s1476_s25, %s19_s25   ;;  %s1420_s24 = sphi %s1474_s24, %s2232_s24   ;;  %s1416_s23 = sphi %s1472_s23, %s2231_s23   ;;  %s1412_s22 = sphi %s1470_s22, %s2230_s22   ;;  %s1408_s21 = sphi %s1468_s21, %s2229_s21   ;;  %s1404_s20 = sphi %s1466_s20, %s2228_s20   ;;  %s1400_s19 = sphi %s1464_s19, %s2227_s19   ;;  %s1396_s18 = sphi %s1462_s18, %s2226_s18  }
   0x7   : > { %s28_s28 = sadd.s32 1, %s1416_s23  ;;  %s31_s29 = sadd.s32 1, %s1420_s24 }
   0x8   : > { %p29_p0 = scmp.ge.s32.totalorder %s28_s28, 2  ;;  %s1008_s30 = sshll.u32 %s1420_s24, 1 }
   0x9   : > { %s150_s6 = sadd.s32 %s1416_s23, %s1008_s30  ;;  %s156_s7 = sadd.s32 1, %s1404_s20 }
   0xa   : > { %s2234_s28 = smov (%p29_p0, %s28_s28), 0  ;;  %s2236_s29 = smov (!%p29_p0, %s31_s29), %s1420_s24 }
   0xb   : > { %p166_p1 = scmp.ne.s32.totalorder %s1404_s20, %s1400_s19  ;;  %p167_p2 = scmp.eq.s32.totalorder %s1004_s26, 3 }
   0xc   : > { %p33_p3 = scmp.ge.s32.totalorder %s2236_s29, 2  ;;  %p172_p4 = scmp.ne.s32.totalorder %s1400_s19, %s1396_s18 }
   0xd   : > { %p1516_p5 = por %p167_p2, %p166_p1  ;;  %p173_p6 = scmp.eq.s32.totalorder %s1005_s27, 3 }
   0xe   : > { %s2238_s29 = smov (%p33_p3, %s2236_s29), 0  ;;  %p1010_p8 = scmp.ge.s32.totalorder %s1424_s25, 1 }
   0xf   : > { %p1522_p7 = por %p173_p6, %p172_p4  ;;  %s1009_s10 = sshll.u32 %s2238_s29, 1 }
  0x10   : > { %p180_p9 = scmp.lt.s32.totalorder %s1424_s25, 5  ;;  %s152_s11 = sadd.s32 %s1009_s10, %s2234_s28 }
  0x11   : > { %s153_s12 = ssub.s32 %s150_s6, %s152_s11  ;;  %p1534_p12 = scmp.eq.s32.totalorder %s1004_s26, 0 }
  0x12   : > { %p1530_p10 = pnand %p1010_p8, %p180_p9  ;;  %p154_p11 = scmp.eq.s32.totalorder %s153_s12, 0 }
  0x13   : > { %s1426_s16 = smov [#allocation3]  }
  0x14   : > { %p1062_p13 = pneg %p1530_p10  ;;  %s198_s17 = sshll.u32 %s1426_s16, 4  ;;  %s199_s17 = int_to_ptr.vmem [resolvable:$true] %s198_s17 }
  0x15   : > { %s1541_s15 = scalar_select %p154_p11, %s1404_s20, %s156_s7  }
  0x16   : > { %p1545_p0 = pnand %p1534_p12, %p1062_p13  ;;  %s1313_s26 = scalar_lea.vmem %s199_s17, 2560 }
  0x17   : > { %p1314_p2 = scmp.ne.s32.totalorder %s199_s17, %s1313_s26  ;;  %p1321_p6 = scmp.lt.s32.totalorder %s199_s17, %s199_s17 }
  0x18   : > { %p1304_p1 = pneg %p1545_p0  ;;  %p1322_p8 = scmp.lt.s32.totalorder %s1313_s26, %s1313_s26 }
  0x1a   : > { %p1316_p3 = pnand %p1314_p2, %p1304_p1  ;;  %p1323_p9 = por %p1322_p8, %p1321_p6 }
  0x1c   : > { %p1317_p4 = pneg %p1316_p3 }
  0x1e   : > { %p1324_p11 = pnand %p1323_p9, %p1317_p4 }
  0x20   : > { %1327 = shalt.err (!%p1324_p11)
}
  0x21   : > { %s1427_s30 = smov 128   ;;  %s1428_s6 = smov 8  }
  0x22   : > { %1065 = dma.hbm_to_vmem [thread:$0]  (!%p1545_p0), %s2113_s3, 2560, %s199_s17, [#allocation4], %s1427_s30, %s1427_s30, %s1428_s6  }
  0x23   : > { %228 = sbr.rel (%p1530_p10) target bundleno = 417 (0x1a1), region = 40 }
  0x28   : > { %1387 = dma.done.wait (%p1534_p12), [#allocation4], 2560  }
  0x29   : > { %1389 = vsyncadd (%p1534_p12), [#allocation4], 4294964736  ;;  %s254_s11 = sand.u32 1, %s1400_s19   ;;  %s1016_s12 = sshll.u32 %s1412_s22, 1 }
  0x2a   : > { %s1566_s16 = sshll.u32 %s254_s11, 3  ;;  %s1569_s17 = sadd.s32 %s1408_s21, %s1016_s12 }
  0x2b   : > { %p259_p10 = scmp.lt.s32.totalorder %s1569_s17, 3  ;;  %s256_s6 = scalar_lea.vmem [#allocation6], %s1566_s16 }
  0x2c   : > { %p1018_p12 = scmp.ne.s32.totalorder %s1408_s21, 0 }
  0x2d   : > { %s260_s13 = scalar_select %p259_p10, %s1569_s17, 3 }
  0x2e   : > { %270 = sbr.rel (%p1018_p12) target bundleno = 199 (0xc7), region = 48 }
  0x2f   : > { %s1017_s27 = sshll.u32 %s260_s13, 3 }
  0x30   : > { %s1576_s30 = scalar_lea.vmem %s2110_s0, %s1017_s27 }
  0x33   : > { %v271_v0 = vld [vmem:[#allocation3] sm:$0xff]  ;;  %v272_v1 = vld [vmem:[#allocation3 + $0x8] sm:$0xff]  ;;  %v273_v2 = vld [vmem:[#allocation3 + $0x10] sm:$0xff] }
  0x34   : > { %1142 = vlog2.f32 %v271_v0  ;;  %v274_v3 = vld [vmem:[#allocation3 + $0x18] sm:$0xff]  ;;  %v275_v4 = vld [vmem:[#allocation3 + $0x20] sm:$0xff]  ;;  %v276_v5 = vld [vmem:[#allocation3 + $0x28] sm:$0xff]  ;;  %v1580_v10 = vsub.f32 0.0, %v271_v0  ;;  %v1582_v12 = vsub.f32 0.0, %v272_v1  ;;  %v1584_v13 = vsub.f32 0.0, %v273_v2 }
  0x35   : > { %1144 = vlog2.f32 %v272_v1  ;;  %v277_v6 = vld [vmem:[#allocation3 + $0x30] sm:$0xff]  ;;  %v278_v7 = vld [vmem:[#allocation3 + $0x38] sm:$0xff]  ;;  %v279_v8 = vld [vmem:[#allocation3 + $0x40] sm:$0xff]  ;;  %v1586_v14 = vsub.f32 0.0, %v274_v3  ;;  %v1588_v17 = vsub.f32 0.0, %v275_v4  ;;  %v1590_v18 = vsub.f32 0.0, %v276_v5 }
  0x36   : > { %1146 = vlog2.f32 %v273_v2  ;;  %v280_v9 = vld [vmem:[#allocation3 + $0x48] sm:$0xff]  ;;  %v281_v11 = vld [vmem:[#allocation3 + $0x50] sm:$0xff]  ;;  %v282_v15 = vld [vmem:[#allocation3 + $0x58] sm:$0xff]  ;;  %v1592_v19 = vsub.f32 0.0, %v277_v6  ;;  %v1594_v23 = vsub.f32 0.0, %v278_v7  ;;  %v1596_v24 = vsub.f32 0.0, %v279_v8 }
  0x37   : > { %1148 = vlog2.f32 %v274_v3  ;;  %v283_v16 = vld [vmem:[#allocation3 + $0x60] sm:$0xff]  ;;  %v284_v20 = vld [vmem:[#allocation3 + $0x68] sm:$0xff]  ;;  %v285_v21 = vld [vmem:[#allocation3 + $0x70] sm:$0xff]  ;;  %v1598_v25 = vsub.f32 0.0, %v280_v9  ;;  %v1600_v29 = vsub.f32 0.0, %v281_v11  ;;  %v354_v30 = vmul.f32 -0.5, %v1580_v10 }
  0x38   : > { %1150 = vlog2.f32 %v275_v4  ;;  %v286_v22 = vld [vmem:[#allocation3 + $0x78] sm:$0xff]  ;;  %v287_v26 = vld [vmem:[#allocation3 + $0x80] sm:$0xff]  ;;  %v288_v27 = vld [vmem:[#allocation3 + $0x88] sm:$0xff]  ;;  %v363_v31 = vmul.f32 -0.5, %v1582_v12  ;;  %v1604_v33 = vsub.f32 0.0, %v282_v15  ;;  %v1606_v34 = vsub.f32 0.0, %v283_v16 }
  0x39   : > { %1152 = vlog2.f32 %v276_v5  ;;  %v289_v28 = vld [vmem:[#allocation3 + $0x90] sm:$0xff]  ;;  %v290_v32 = vld [vmem:[#allocation3 + $0x98] sm:$0xff]  ;;  %v372_v35 = vmul.f32 -0.5, %v1584_v13  ;;  %v1609_v37 = vsub.f32 0.0, %v284_v20  ;;  %v1611_v38 = vsub.f32 0.0, %v285_v21 }
  0x3a   : > { %1154 = vlog2.f32 %v277_v6  ;;  %v1613_v39 = vsub.f32 0.0, %v286_v22  ;;  %v1615_v41 = vsub.f32 0.0, %v287_v26  ;;  %v1617_v42 = vsub.f32 0.0, %v288_v27 }
  0x3b   : > { %1156 = vlog2.f32 %v278_v7  ;;  %v1619_v43 = vsub.f32 0.0, %v289_v28  ;;  %v1621_v45 = vsub.f32 0.0, %v290_v32  ;;  %v355_v46 = vadd.f32 1.0, %v354_v30 }
  0x3c   : > { %1158 = vlog2.f32 %v279_v8  ;;  %v364_v47 = vadd.f32 1.0, %v363_v31  ;;  %v351_v49 = vadd.f32 1.0, %v1580_v10  ;;  %v357_v50 = vand.u32 2147483647, %v1580_v10 }
  0x3d   : > { %1160 = vlog2.f32 %v280_v9  ;;  %v373_v51 = vadd.f32 1.0, %v372_v35  ;;  %v360_v53 = vadd.f32 1.0, %v1582_v12  ;;  %v366_v54 = vand.u32 2147483647, %v1582_v12 }
  0x3e   : > { %1162 = vlog2.f32 %v281_v11  ;;  %v381_v55 = vmul.f32 -0.5, %v1586_v14  ;;  %v369_v57 = vadd.f32 1.0, %v1584_v13  ;;  %v375_v58 = vand.u32 2147483647, %v1584_v13 }
  0x3f   : > { %1164 = vlog2.f32 %v282_v15  ;;  %v390_v59 = vmul.f32 -0.5, %v1588_v17  ;;  %v1632_v61 = vmul.f32 %v355_v46, %v1580_v10  ;;  %v1635_v62 = vmul.f32 %v364_v47, %v1582_v12 }
  0x40   : > { %1166 = vlog2.f32 %v283_v16  ;;  %v378_v63 = vadd.f32 1.0, %v1586_v14  ;;  %v1639_v1 = vmul.f32 %v373_v51, %v1584_v13  ;;  %v387_v3 = vadd.f32 1.0, %v1588_v17 }
  0x41   : > { %v1143_v36 = vpop.eup %1142  ;;  %1168 = vlog2.f32 %v284_v20  ;;  %v382_v5 = vadd.f32 1.0, %v381_v55  ;;  %v396_v6 = vadd.f32 1.0, %v1590_v18  ;;  %v399_v7 = vmul.f32 -0.5, %v1590_v18 }
  0x42   : > { %v1145_v40 = vpop.eup %1144  ;;  %1170 = vlog2.f32 %v285_v21  ;;  %v1645_v9 = vmul.f32 0.6931472, %v1143_v36  ;;  %v391_v11 = vadd.f32 1.0, %v390_v59  ;;  %v405_v15 = vadd.f32 1.0, %v1592_v19 }
  0x43   : > { %v1147_v44 = vpop.eup %1146  ;;  %1172 = vlog2.f32 %v286_v22  ;;  %v1648_v20 = vmul.f32 0.6931472, %v1145_v40  ;;  %v393_v21 = vand.u32 2147483647, %v1588_v17  ;;  %v414_v22 = vadd.f32 1.0, %v1594_v23 }
  0x44   : > { %v1149_v48 = vpop.eup %1148  ;;  %1174 = vlog2.f32 %v287_v26  ;;  %v423_v30 = vadd.f32 1.0, %v1596_v24  ;;  %v1659_v35 = vmul.f32 %v382_v5, %v1586_v14  ;;  %v400_v36 = vadd.f32 1.0, %v399_v7 }
  0x45   : > { %v1151_v52 = vpop.eup %1150  ;;  %1176 = vlog2.f32 %v288_v27  ;;  %v1652_v27 = vmul.f32 0.6931472, %v1147_v44  ;;  %v1664_v47 = vmul.f32 %v391_v11, %v1588_v17  ;;  %v417_v44 = vmul.f32 -0.5, %v1594_v23 }
  0x46   : > { %v1153_v56 = vpop.eup %1152  ;;  %1178 = vlog2.f32 %v289_v28  ;;  %v408_v28 = vmul.f32 -0.5, %v1592_v19  ;;  %v1661_v46 = vmul.f32 0.6931472, %v1151_v52  ;;  %vm1679_vm0 = vcmp.lt.f32.partialorder %v357_v50, 0.0004427343 }
  0x47   : > { %v1155_v60 = vpop.eup %1154  ;;  %1180 = vlog2.f32 %v290_v32  ;;  %v1656_v32 = vmul.f32 0.6931472, %v1149_v48  ;;  %v1667_v51 = vmul.f32 0.6931472, %v1153_v56  ;;  %v402_v48 = vand.u32 2147483647, %v1590_v18 }
  0x48   : > { %v1157_v0 = vpop.eup %1156  ;;  %1182 = vlog2.f32 %v351_v49  ;;  %v409_v52 = vadd.f32 1.0, %v408_v28  ;;  %v411_v5 = vand.u32 2147483647, %v1592_v19  ;;  %v435_v11 = vmul.f32 -0.5, %v1598_v25 }
  0x49   : > { %v1159_v4 = vpop.eup %1158  ;;  %1184 = vlog2.f32 %v360_v53  ;;  %v426_v53 = vmul.f32 -0.5, %v1596_v24  ;;  %v1673_v59 = vmul.f32 0.6931472, %v1157_v0  ;;  %vm1697_vm1 = vcmp.lt.f32.partialorder %v366_v54, 0.0004427343 }
  0x4a   : > { %v1161_v8 = vpop.eup %1160  ;;  %1186 = vlog2.f32 %v369_v57  ;;  %v1671_v57 = vmul.f32 0.6931472, %v1155_v60  ;;  %v432_v60 = vadd.f32 1.0, %v1598_v25  ;;  %vm1714_vm2 = vcmp.lt.f32.partialorder %v375_v58, 0.0004427343 }
  0x4b   : > { %v1163_v16 = vpop.eup %1162  ;;  %1188 = vlog2.f32 %v378_v63  ;;  %2131 = vst [vmem:[#allocation10_spill] sm:$0xff] %v1673_v59  ;;  %v1675_v63 = vmul.f32 0.6931472, %v1159_v4  ;;  %v418_v4 = vadd.f32 1.0, %v417_v44  ;;  %vm1730_vm4 = vcmp.lt.f32.partialorder %v393_v21, 0.0004427343 }
  0x4c   : > { %v1165_v26 = vpop.eup %1164  ;;  %1190 = vlog2.f32 %v387_v3  ;;  %2130 = vst [vmem:[#allocation9_spill] sm:$0xff] %v1671_v57  ;;  %v1684_v3 = vmul.f32 %v400_v36, %v1590_v18  ;;  %v1690_v7 = vmul.f32 0.6931472, %v1163_v16  ;;  %v450_v36 = vadd.f32 1.0, %v1604_v33 }
  0x4d   : > { %v1167_v31 = vpop.eup %1166  ;;  %1192 = vlog2.f32 %v396_v6  ;;  %2132 = vst [vmem:[#allocation11_spill] sm:$0xff] %v1675_v63  ;;  %v1688_v6 = vmul.f32 0.6931472, %v1161_v8  ;;  %v1693_v50 = vmul.f32 0.6931472, %v1165_v26  ;;  %v444_v8 = vmul.f32 -0.5, %v1600_v29 }
  0x4e   : > { %v1169_v40 = vpop.eup %1168  ;;  %1194 = vlog2.f32 %v405_v15  ;;  %2136 = vst [vmem:[#allocation13_spill] sm:$0xff] %v1690_v7  ;;  %v427_v15 = vadd.f32 1.0, %v426_v53  ;;  %v1703_v16 = vmul.f32 0.6931472, %v1167_v31  ;;  %v420_v26 = vand.u32 2147483647, %v1594_v23 }
  0x4f   : > { %v1171_v49 = vpop.eup %1170  ;;  %1196 = vlog2.f32 %v414_v22  ;;  %2135 = vst [vmem:[#allocation12_spill] sm:$0xff] %v1688_v6  ;;  %2137 = vst [vmem:[#allocation14_spill] sm:$0xff] %v1693_v50  ;;  %v441_v22 = vadd.f32 1.0, %v1600_v29  ;;  %v1710_v54 = vmul.f32 0.6931472, %v1169_v40  ;;  %v459_v31 = vadd.f32 1.0, %v1606_v34 }
  0x50   : > { %v1173_v55 = vpop.eup %1172  ;;  %1198 = vlog2.f32 %v423_v30  ;;  %2140 = vst [vmem:[#allocation15_spill] sm:$0xff] %v1703_v16  ;;  %v1706_v30 = vmul.f32 %v409_v52, %v1592_v19  ;;  %v429_v53 = vand.u32 2147483647, %v1596_v24  ;;  %v1720_v52 = vmul.f32 0.6931472, %v1171_v49 }
  0x51   : > { %v1175_v17 = vpop.eup %1174  ;;  %2142 = vst [vmem:[#allocation17_spill] sm:$0xff] %v1710_v54  ;;  %1200 = vlog2.f32 %v432_v60  ;;  %v1722_v2 = vmul.f32 0.6931472, %v1173_v55  ;;  %v2147_v16 = vand.u32 2147483647, %v1586_v14  ;;  %v1735_v58 = vmul.f32 %v418_v4, %v1594_v23 }
  0x52   : > { %v1177_v0 = vpop.eup %1176  ;;  %2141 = vst [vmem:[#allocation16_spill] sm:$0xff] %v1706_v30  ;;  %2145 = vst [vmem:[#allocation18_spill] sm:$0xff] %v1720_v52  ;;  %v436_v60 = vadd.f32 1.0, %v435_v11  ;;  %v1737_v50 = vmul.f32 0.6931472, %v1175_v17  ;;  %v1744_v14 = vmul.f32 %v427_v15, %v1596_v24  ;;  %1202 = vlog2.f32 %v441_v22 }
  0x53   : > { %v1179_v10 = vpop.eup %1178  ;;  %2146 = vst [vmem:[#allocation19_spill] sm:$0xff] %v1722_v2  ;;  %vm1726_vm3 = vcmp.lt.f32.partialorder %v2147_v16, 0.0004427343  ;;  %2152 = vst [vmem:[#allocation20_spill] sm:$0xff] %v1735_v58  ;;  %vm1739_vm5 = vcmp.lt.f32.partialorder %v402_v48, 0.0004427343  ;;  %1204 = vlog2.f32 %v450_v36 }
  0x54   : > { %v1181_v28 = vpop.eup %1180  ;;  %2153 = vst [vmem:[#allocation21_spill] sm:$0xff] %v1737_v50  ;;  %2156 = vst [vmem:[#allocation22_spill] sm:$0xff] %v1744_v14  ;;  %v445_v55 = vadd.f32 1.0, %v444_v8  ;;  %vm1748_vm6 = vcmp.lt.f32.partialorder %v411_v5, 0.0004427343  ;;  %v2157_v2 = vmov 0  ;;  %1206 = vlog2.f32 %v459_v31 }
  0x55   : > { %v1183_v12 = vpop.eup %1182  ;;  %v2158_v2 = vsel %vm1748_vm6, 4294967295, %v2157_v2  ;;  %vm1752_vm7 = vcmp.lt.f32.partialorder %v420_v26, 0.0004427343  ;;  %v2160_v23 = vmov 0  ;;  %v438_v48 = vand.u32 2147483647, %v1598_v25 }
  0x56   : > { %v1185_v19 = vpop.eup %1184  ;;  %v1746_v16 = vmul.f32 0.6931472, %v1183_v12  ;;  %2159 = vst [vmem:[#allocation23_spill] sm:$0xff] %v2158_v2  ;;  %v2161_v23 = vsel %vm1752_vm7, 4294967295, %v2160_v23  ;;  %v468_v17 = vadd.f32 1.0, %v1609_v37  ;;  %v2165_v15 = vmov 0 }
  0x57   : > { %v1187_v54 = vpop.eup %1186  ;;  %2162 = vst [vmem:[#allocation24_spill] sm:$0xff] %v2161_v23  ;;  %v1758_v4 = vmul.f32 0.6931472, %v1177_v0  ;;  %v1760_v11 = vmul.f32 0.6931472, %v1179_v10  ;;  %v453_v5 = vmul.f32 -0.5, %v1604_v33  ;;  %v1772_v36 = vmul.f32 %v436_v60, %v1598_v25 }
  0x58   : > { %v1189_v21 = vpop.eup %1188  ;;  %vm1762_vm8 = vcmp.lt.f32.partialorder %v429_v53, 0.0004427343  ;;  %v1767_v8 = vmul.f32 0.6931472, %v1181_v28  ;;  %v1769_v26 = vmul.f32 0.6931472, %v1185_v19  ;;  %v1776_v10 = vmul.f32 %v445_v55, %v1600_v29 }
  0x59   : > { %v1191_v24 = vpop.eup %1190  ;;  %2163 = vst [vmem:[#allocation25_spill] sm:$0xff] %v1758_v4  ;;  %2164 = vst [vmem:[#allocation26_spill] sm:$0xff] %v1760_v11  ;;  %v2166_v15 = vsel %vm1762_vm8, 4294967295, %v2165_v15  ;;  %v447_v0 = vand.u32 2147483647, %v1600_v29  ;;  %v462_v11 = vmul.f32 -0.5, %v1606_v34  ;;  %1208 = vlog2.f32 %v468_v17 }
  0x5a   : > { %2167 = vst [vmem:[#allocation27_spill] sm:$0xff] %v2166_v15  ;;  %v1193_v22 = vpop.eup %1192  ;;  %2168 = vst [vmem:[#allocation28_spill] sm:$0xff] %v1767_v8  ;;  %v456_v53 = vand.u32 2147483647, %v1604_v33  ;;  %v1784_v19 = vmul.f32 0.6931472, %v1187_v54 }
  0x5b   : > { %v1195_v12 = vpop.eup %1194  ;;  %v471_v25 = vmul.f32 -0.5, %v1609_v37  ;;  %v477_v60 = vadd.f32 1.0, %v1611_v38  ;;  %v1788_v29 = vmul.f32 0.6931472, %v1189_v21  ;;  %v1790_v55 = vmul.f32 0.6931472, %v1191_v24 }
  0x5c   : > { %v1197_v31 = vpop.eup %1196  ;;  %v454_v4 = vadd.f32 1.0, %v453_v5  ;;  %v486_v17 = vadd.f32 1.0, %v1613_v39  ;;  %v1797_v28 = vmul.f32 0.6931472, %v1193_v22  ;;  %v465_v54 = vand.u32 2147483647, %v1606_v34 }
  0x5d   : > { %v1199_v8 = vpop.eup %1198  ;;  %1210 = vlog2.f32 %v477_v60  ;;  %v1800_v52 = vmul.f32 0.6931472, %v1195_v12  ;;  %v1802_v7 = vmul.f32 0.6931472, %v1197_v31  ;;  %vm1804_vm9 = vcmp.lt.f32.partialorder %v438_v48, 0.0004427343 }
  0x5e   : > { %v463_v24 = vadd.f32 1.0, %v462_v11  ;;  %1212 = vlog2.f32 %v486_v17  ;;  %v1812_v22 = vmul.f32 0.6931472, %v1199_v8  ;;  %vm1814_vm10 = vcmp.lt.f32.partialorder %v447_v0, 0.0004427343  ;;  %v1201_v60 = vpop.eup %1200  ;;  %v2202_v40 = vld [vmem:[#allocation9_spill] sm:$0xff] }
  0x5f   : > { %2169 = vst [vmem:[#allocation29_spill] sm:$0xff] %v1800_v52  ;;  %2170 = vst [vmem:[#allocation30_spill] sm:$0xff] %v1802_v7  ;;  %v472_v12 = vadd.f32 1.0, %v471_v25  ;;  %v495_v31 = vadd.f32 1.0, %v1615_v41  ;;  %v1828_v8 = vmul.f32 %v454_v4, %v1604_v33  ;;  %vm1830_vm11 = vcmp.lt.f32.partialorder %v456_v53, 0.0004427343  ;;  %v1203_v17 = vpop.eup %1202 }
  0x60   : > { %2173 = vst [vmem:[#allocation31_spill] sm:$0xff] %v1812_v22  ;;  %v474_v25 = vand.u32 2147483647, %v1609_v37  ;;  %vm1839_vm12 = vcmp.lt.f32.partialorder %v465_v54, 0.0004427343  ;;  %v480_v11 = vmul.f32 -0.5, %v1611_v38  ;;  %v1853_v53 = vmul.f32 %v463_v24, %v1606_v34  ;;  %v1205_v63 = vpop.eup %1204 }
  0x61   : > { %1214 = vlog2.f32 %v495_v31  ;;  %v504_v54 = vadd.f32 1.0, %v1617_v42  ;;  %v1861_v5 = vmul.f32 %v472_v12, %v1609_v37  ;;  %v483_v33 = vand.u32 2147483647, %v1611_v38  ;;  %v1207_v15 = vpop.eup %1206 }
  0x62   : > { %v489_v6 = vmul.f32 -0.5, %v1613_v39  ;;  %v1865_v4 = vmul.f32 0.6931472, %v1201_v60  ;;  %vm1867_vm13 = vcmp.lt.f32.partialorder %v474_v25, 0.0004427343  ;;  %v498_v24 = vmul.f32 -0.5, %v1615_v41 }
  0x63   : > { %v513_v59 = vadd.f32 1.0, %v1619_v43  ;;  %v481_v31 = vadd.f32 1.0, %v480_v11  ;;  %v507_v37 = vmul.f32 -0.5, %v1617_v42  ;;  %v516_v12 = vmul.f32 -0.5, %v1619_v43 }
  0x64   : > { %v522_v22 = vadd.f32 1.0, %v1621_v45  ;;  %v443_v14 = vmul.f32 0.6931472, %v1203_v17  ;;  %v492_v60 = vand.u32 2147483647, %v1613_v39  ;;  %1216 = vlog2.f32 %v504_v54 }
  0x65   : > { %v525_v25 = vmul.f32 -0.5, %v1621_v45  ;;  %v452_v58 = vmul.f32 0.6931472, %v1205_v63  ;;  %v490_v23 = vadd.f32 1.0, %v489_v6  ;;  %v501_v57 = vand.u32 2147483647, %v1615_v41 }
  0x66   : > { %v1209_v7 = vpop.eup %1208  ;;  %1218 = vlog2.f32 %v513_v59  ;;  %v461_v52 = vmul.f32 0.6931472, %v1207_v15  ;;  %vm1879_vm14 = vcmp.lt.f32.partialorder %v483_v33, 0.0004427343  ;;  %v499_v30 = vadd.f32 1.0, %v498_v24  ;;  %v2200_v18 = vld [vmem:[#allocation29_spill] sm:$0xff] }
  0x67   : > { %1220 = vlog2.f32 %v522_v22  ;;  %v440_v17 = vsel %vm1804_vm9, %v1772_v36, %v1865_v4  ;;  %v482_v54 = vmul.f32 %v481_v31, %v1611_v38  ;;  %v508_v2 = vadd.f32 1.0, %v507_v37  ;;  %v2219_v33 = vld [vmem:[#allocation17_spill] sm:$0xff] }
  0x68   : > { %v517_v63 = vadd.f32 1.0, %v516_v12  ;;  %v449_v59 = vsel %vm1814_vm10, %v1776_v10, %v443_v14  ;;  %v470_v15 = vmul.f32 0.6931472, %v1209_v7  ;;  %vm1891_vm15 = vcmp.lt.f32.partialorder %v492_v60, 0.0004427343 }
  0x69   : > { %v526_v22 = vadd.f32 1.0, %v525_v25  ;;  %v458_v36 = vsel %vm1830_vm11, %v1828_v8, %v452_v58  ;;  %v491_v38 = vmul.f32 %v490_v23, %v1613_v39  ;;  %vm1899_vm9 = vcmp.lt.f32.partialorder %v501_v57, 0.0004427343  ;;  %v2210_v8 = vld [vmem:[#allocation31_spill] sm:$0xff]  ;;  %v2215_v25 = vld [vmem:[#allocation12_spill] sm:$0xff] }
  0x6a   : > { %v1211_v6 = vpop.eup %1210  ;;  %v510_v50 = vand.u32 2147483647, %v1617_v42  ;;  %v467_v7 = vsel %vm1839_vm12, %v1853_v53, %v461_v52  ;;  %v500_v10 = vmul.f32 %v499_v30, %v1615_v41  ;;  %v519_v4 = vand.u32 2147483647, %v1619_v43  ;;  %v2212_v53 = vld [vmem:[#allocation11_spill] sm:$0xff] }
  0x6b   : > { %v1213_v24 = vpop.eup %1212  ;;  %v479_v14 = vmul.f32 0.6931472, %v1211_v6  ;;  %v1910_v58 = vmul.f32 %v508_v2, %v1617_v42  ;;  %v1913_v39 = vmul.f32 %v517_v63, %v1619_v43  ;;  %v528_v57 = vand.u32 2147483647, %v1621_v45  ;;  %v2217_v6 = vld [vmem:[#allocation14_spill] sm:$0xff] }
  0x6c   : > { %v488_v31 = vmul.f32 0.6931472, %v1213_v24  ;;  %v476_v48 = vsel %vm1867_vm13, %v1861_v5, %v470_v15  ;;  %v1920_v52 = vmul.f32 %v526_v22, %v1621_v45  ;;  %v2188_v41 = vsel %vm1679_vm0, %v1632_v61, %v1746_v16  ;;  %v2204_v16 = vld [vmem:[#allocation20_spill] sm:$0xff]  ;;  %v2209_v5 = vld [vmem:[#allocation22_spill] sm:$0xff]  ;;  %v2218_v22 = vld [vmem:[#allocation15_spill] sm:$0xff] }
  0x6d   : > { %v531_v42 = vsub.f32 %v1645_v9, %v2188_v41  ;;  %v2189_v43 = vsel %vm1697_vm1, %v1635_v62, %v1769_v26  ;;  %vm1934_vm10 = vcmp.lt.f32.partialorder %v510_v50, 0.0004427343  ;;  %v2192_v45 = vsel %vm1714_vm2, %v1639_v1, %v1784_v19  ;;  %v2205_v26 = vld [vmem:[#allocation30_spill] sm:$0xff] }
  0x6e   : > { %v1215_v23 = vpop.eup %1214  ;;  %v532_v2 = vsub.f32 %v1648_v20, %v2189_v43  ;;  %v533_v61 = vsub.f32 %v1652_v27, %v2192_v45  ;;  %v2193_v9 = vsel %vm1726_vm3, %v1659_v35, %v1788_v29  ;;  %v2194_v20 = vsel %vm1730_vm4, %v1664_v47, %v1790_v55  ;;  %v1965_v35 = vld [vmem:[%s2112_s2] sm:$0xff]  ;;  %v2207_v19 = vld [vmem:[#allocation10_spill] sm:$0xff]  ;;  %v2221_v43 = vld [vmem:[#allocation19_spill] sm:$0xff] }
  0x6f   : > { %v534_v62 = vsub.f32 %v1656_v32, %v2193_v9  ;;  %v535_v56 = vsub.f32 %v1661_v46, %v2194_v20  ;;  %v2195_v1 = vsel %vm1739_vm5, %v1684_v3, %v1797_v28  ;;  %v1970_v32 = vld [vmem:[%s2112_s2 + $0x8] sm:$0xff]  ;;  %v485_v46 = vsel %vm1879_vm14, %v482_v54, %v479_v14  ;;  %v2216_v54 = vld [vmem:[#allocation13_spill] sm:$0xff]  ;;  %v2225_v47 = vld [vmem:[#allocation28_spill] sm:$0xff] }
  0x70   : > { %v536_v27 = vsub.f32 %v1667_v51, %v2195_v1  ;;  %vm1974_vm0 = vcmp.lt.f32.partialorder %v519_v4, 0.0004427343  ;;  %v2199_v51 = vld [vmem:[#allocation16_spill] sm:$0xff]  ;;  %v2206_v28 = vsel %vm1752_vm7, %v2204_v16, %v2205_v26  ;;  %v2211_v0 = vsel %vm1762_vm8, %v2209_v5, %v2210_v8 }
  0x71   : > { %v2201_v44 = vsel %vm1748_vm6, %v2199_v51, %v2200_v18  ;;  %v538_v29 = vsub.f32 %v2207_v19, %v2206_v28  ;;  %v539_v34 = vsub.f32 %v2212_v53, %v2211_v0  ;;  %v494_v37 = vsel %vm1891_vm15, %v491_v38, %v488_v31  ;;  %v1217_v4 = vpop.eup %1216  ;;  %v2220_v31 = vld [vmem:[#allocation18_spill] sm:$0xff] }
  0x72   : > { %v537_v13 = vsub.f32 %v2202_v40, %v2201_v44  ;;  %v497_v12 = vmul.f32 0.6931472, %v1215_v23  ;;  %vm1998_vm1 = vcmp.lt.f32.partialorder %v528_v57, 0.0004427343  ;;  %v540_v11 = vsub.f32 %v2215_v25, %v440_v17  ;;  %v2222_v44 = vld [vmem:[#allocation21_spill] sm:$0xff] }
  0x73   : > { %v541_v63 = vsub.f32 %v2216_v54, %v449_v59  ;;  %v542_v15 = vsub.f32 %v2217_v6, %v458_v36  ;;  %v543_v24 = vsub.f32 %v2218_v22, %v467_v7  ;;  %v553_v50 = vadd.f32 %v1965_v35, %v531_v42  ;;  %v1219_v17 = vpop.eup %1218  ;;  %v2223_v25 = vld [vmem:[#allocation25_spill] sm:$0xff]  ;;  %v2224_v54 = vld [vmem:[#allocation26_spill] sm:$0xff] }
  0x74   : > { %v554_v14 = vadd.f32 %v1970_v32, %v532_v2  ;;  %v544_v38 = vsub.f32 %v2219_v33, %v476_v48  ;;  %v545_v57 = vsub.f32 %v2220_v31, %v485_v46  ;;  %v555_v23 = vadd.f32 %v1965_v35, %v533_v61  ;;  %v1221_v45 = vpop.eup %1220 }
  0x75   : > { %v556_v41 = vadd.f32 %v1970_v32, %v534_v62  ;;  %v546_v59 = vsub.f32 %v2221_v43, %v494_v37  ;;  %v557_v36 = vadd.f32 %v1965_v35, %v535_v56  ;;  %v558_v7 = vadd.f32 %v1970_v32, %v536_v27 }
  0x76   : > { %v559_v42 = vadd.f32 %v1965_v35, %v537_v13  ;;  %v503_v2 = vsel %vm1899_vm9, %v500_v10, %v497_v12  ;;  %v560_v48 = vadd.f32 %v1970_v32, %v538_v29  ;;  %v561_v9 = vadd.f32 %v1965_v35, %v539_v34 }
  0x77   : > { %v562_v61 = vadd.f32 %v1970_v32, %v540_v11  ;;  %v506_v62 = vmul.f32 0.6931472, %v1217_v4  ;;  %v563_v20 = vadd.f32 %v1965_v35, %v541_v63  ;;  %v1019_v1 = vmul.f32 -1.5, %v553_v50 }
  0x78   : > { %v1020_v46 = vmul.f32 -1.5, %v554_v14  ;;  %v515_v56 = vmul.f32 0.6931472, %v1219_v17  ;;  %v564_v27 = vadd.f32 %v1970_v32, %v542_v15  ;;  %v1021_v3 = vmul.f32 -1.5, %v555_v23 }
  0x79   : > { %v1022_v51 = vmul.f32 -1.5, %v556_v41  ;;  %v524_v18 = vmul.f32 0.6931472, %v1221_v45  ;;  %v547_v21 = vsub.f32 %v2222_v44, %v503_v2  ;;  %v565_v10 = vadd.f32 %v1965_v35, %v543_v24 }
  0x7a   : > { %v1023_v40 = vmul.f32 -1.5, %v557_v36  ;;  %v566_v13 = vadd.f32 %v1970_v32, %v544_v38  ;;  %v567_v49 = vadd.f32 %v1965_v35, %v545_v57  ;;  %v568_v16 = vadd.f32 %v1970_v32, %v546_v59 }
  0x7b   : > { %v1024_v26 = vmul.f32 -1.5, %v558_v7  ;;  %v512_v28 = vsel %vm1934_vm10, %v1910_v58, %v506_v62  ;;  %v1025_v19 = vmul.f32 -1.5, %v559_v42  ;;  %v613_v29 = vmul.f32 1.442695, %v1019_v1 }
  0x7c   : > { %v615_v55 = vmul.f32 1.442695, %v1020_v46  ;;  %v521_v5 = vsel %vm1974_vm0, %v1913_v39, %v515_v56  ;;  %v1026_v8 = vmul.f32 -1.5, %v560_v48  ;;  %v617_v0 = vmul.f32 1.442695, %v1021_v3 }
  0x7d   : > { %v619_v53 = vmul.f32 1.442695, %v1022_v51  ;;  %v530_v34 = vsel %vm1998_vm1, %v1920_v52, %v524_v18  ;;  %v1027_v37 = vmul.f32 -1.5, %v561_v9  ;;  %1222 = vpow2.f32 %v613_v29 }
  0x7e   : > { %v621_v12 = vmul.f32 1.442695, %v1023_v40  ;;  %v548_v30 = vsub.f32 %v2223_v25, %v512_v28  ;;  %v1028_v58 = vmul.f32 -1.5, %v562_v61  ;;  %1224 = vpow2.f32 %v615_v55 }
  0x7f   : > { %v623_v11 = vmul.f32 1.442695, %v1024_v26  ;;  %v549_v63 = vsub.f32 %v2224_v54, %v521_v5  ;;  %v1029_v6 = vmul.f32 -1.5, %v563_v20  ;;  %1226 = vpow2.f32 %v617_v0 }
  0x80   : > { %v625_v39 = vmul.f32 1.442695, %v1025_v19  ;;  %v550_v15 = vsub.f32 %v2225_v47, %v530_v34  ;;  %v1030_v22 = vmul.f32 -1.5, %v564_v27  ;;  %1228 = vpow2.f32 %v619_v53 }
  0x81   : > { %v627_v24 = vmul.f32 1.442695, %v1026_v8  ;;  %v569_v52 = vadd.f32 %v1965_v35, %v547_v21  ;;  %v1031_v60 = vmul.f32 -1.5, %v565_v10  ;;  %1230 = vpow2.f32 %v621_v12 }
  0x82   : > { %v629_v50 = vmul.f32 1.442695, %v1027_v37  ;;  %v570_v14 = vadd.f32 %v1970_v32, %v548_v30  ;;  %v1032_v4 = vmul.f32 -1.5, %v566_v13  ;;  %1232 = vpow2.f32 %v623_v11 }
  0x83   : > { %v631_v33 = vmul.f32 1.442695, %v1028_v58  ;;  %v571_v38 = vadd.f32 %v1965_v35, %v549_v63  ;;  %v1033_v31 = vmul.f32 -1.5, %v567_v49  ;;  %1234 = vpow2.f32 %v625_v39 }
  0x84   : > { %v633_v57 = vmul.f32 1.442695, %v1029_v6  ;;  %v572_v23 = vadd.f32 %v1970_v32, %v550_v15  ;;  %v1034_v41 = vmul.f32 -1.5, %v568_v16  ;;  %1236 = vpow2.f32 %v627_v24 }
  0x85   : > { %v635_v17 = vmul.f32 1.442695, %v1030_v22  ;;  %v1035_v43 = vmul.f32 -1.5, %v569_v52  ;;  %1238 = vpow2.f32 %v629_v50  ;;  %v637_v59 = vmul.f32 1.442695, %v1031_v60 }
  0x86   : > { %v1036_v36 = vmul.f32 -1.5, %v570_v14  ;;  %1240 = vpow2.f32 %v631_v33  ;;  %v639_v7 = vmul.f32 1.442695, %v1032_v4  ;;  %v1037_v42 = vmul.f32 -1.5, %v571_v38 }
  0x87   : > { %1242 = vpow2.f32 %v633_v57  ;;  %v641_v45 = vmul.f32 1.442695, %v1033_v31  ;;  %v1038_v2 = vmul.f32 -1.5, %v572_v23  ;;  %v643_v35 = vmul.f32 1.442695, %v1034_v41 }
  0x88   : > { %1244 = vpow2.f32 %v635_v17  ;;  %v645_v48 = vmul.f32 1.442695, %v1035_v43  ;;  %v647_v32 = vmul.f32 1.442695, %v1036_v36  ;;  %v649_v62 = vmul.f32 1.442695, %v1037_v42 }
  0x89   : > { %1246 = vpow2.f32 %v637_v59  ;;  %v651_v1 = vmul.f32 1.442695, %v1038_v2 }
  0x8a   : > { %v1223_v9 = vpop.eup %1222  ;;  %1248 = vpow2.f32 %v639_v7 }
  0x8b   : > { %v1225_v61 = vpop.eup %1224  ;;  %1250 = vpow2.f32 %v641_v45  ;;  %v653_v56 = vadd.f32 1.0, %v1223_v9 }
  0x8c   : > { %v1227_v20 = vpop.eup %1226  ;;  %1252 = vpow2.f32 %v643_v35  ;;  %v654_v3 = vadd.f32 1.0, %v1225_v61 }
  0x8d   : > { %v1229_v46 = vpop.eup %1228  ;;  %1254 = vpow2.f32 %v645_v48  ;;  %v655_v18 = vadd.f32 1.0, %v1227_v20 }
  0x8e   : > { %v1231_v27 = vpop.eup %1230  ;;  %1256 = vpow2.f32 %v647_v32  ;;  %v656_v21 = vadd.f32 1.0, %v1229_v46 }
  0x8f   : > { %v1233_v51 = vpop.eup %1232  ;;  %1258 = vpow2.f32 %v649_v62  ;;  %v657_v40 = vadd.f32 1.0, %v1231_v27 }
  0x90   : > { %v1235_v44 = vpop.eup %1234  ;;  %1260 = vpow2.f32 %v651_v1  ;;  %v658_v49 = vadd.f32 1.0, %v1233_v51 }
  0x91   : > { %v1237_v10 = vpop.eup %1236  ;;  %1262 = vrcp.f32 %v653_v56  ;;  %v659_v26 = vadd.f32 1.0, %v1235_v44 }
  0x92   : > { %v1239_v13 = vpop.eup %1238  ;;  %1264 = vrcp.f32 %v654_v3  ;;  %v660_v19 = vadd.f32 1.0, %v1237_v10 }
  0x93   : > { %v1241_v16 = vpop.eup %1240  ;;  %1266 = vrcp.f32 %v655_v18  ;;  %v661_v55 = vadd.f32 1.0, %v1239_v13 }
  0x94   : > { %v1243_v28 = vpop.eup %1242  ;;  %1268 = vrcp.f32 %v656_v21  ;;  %v662_v8 = vadd.f32 1.0, %v1241_v16 }
  0x95   : > { %v1245_v29 = vpop.eup %1244  ;;  %1270 = vrcp.f32 %v657_v40  ;;  %v663_v53 = vadd.f32 1.0, %v1243_v28 }
  0x96   : > { %v1247_v5 = vpop.eup %1246  ;;  %1272 = vrcp.f32 %v658_v49  ;;  %v664_v37 = vadd.f32 1.0, %v1245_v29 }
  0x97   : > { %v1249_v0 = vpop.eup %1248  ;;  %1274 = vrcp.f32 %v659_v26  ;;  %v665_v25 = vadd.f32 1.0, %v1247_v5 }
  0x98   : > { %v1251_v34 = vpop.eup %1250  ;;  %1276 = vrcp.f32 %v660_v19  ;;  %v666_v58 = vadd.f32 1.0, %v1249_v0 }
  0x99   : > { %v1253_v12 = vpop.eup %1252  ;;  %1278 = vrcp.f32 %v661_v55  ;;  %v667_v54 = vadd.f32 1.0, %v1251_v34 }
  0x9a   : > { %v1255_v30 = vpop.eup %1254  ;;  %1280 = vrcp.f32 %v662_v8  ;;  %v668_v6 = vadd.f32 1.0, %v1253_v12 }
  0x9b   : > { %v1257_v11 = vpop.eup %1256  ;;  %1282 = vrcp.f32 %v663_v53  ;;  %v669_v47 = vadd.f32 1.0, %v1255_v30 }
  0x9c   : > { %v1259_v63 = vpop.eup %1258  ;;  %1284 = vrcp.f32 %v664_v37  ;;  %v670_v22 = vadd.f32 1.0, %v1257_v11 }
  0x9d   : > { %v1261_v39 = vpop.eup %1260  ;;  %1286 = vrcp.f32 %v665_v25  ;;  %v671_v52 = vadd.f32 1.0, %v1259_v63 }
  0x9e   : > { %v1263_v15 = vpop.eup %1262  ;;  %1288 = vrcp.f32 %v666_v58  ;;  %v672_v50 = vadd.f32 1.0, %v1261_v39 }
  0x9f   : > { %v1265_v24 = vpop.eup %1264  ;;  %1290 = vrcp.f32 %v667_v54  ;;  %v713_v4 = vmul.f32 1.2, %v1263_v15 }
  0xa0   : > { %v1267_v60 = vpop.eup %1266  ;;  %1292 = vrcp.f32 %v668_v6  ;;  %v714_v38 = vmul.f32 1.2, %v1265_v24 }
  0xa1   : > { %v1269_v14 = vpop.eup %1268  ;;  %1294 = vrcp.f32 %v669_v47  ;;  %v715_v57 = vmul.f32 1.2, %v1267_v60  ;;  %v733_v7 = vadd.f32 -0.1, %v713_v4 }
  0xa2   : > { %v1271_v33 = vpop.eup %1270  ;;  %1296 = vrcp.f32 %v670_v22  ;;  %v716_v23 = vmul.f32 1.2, %v1269_v14  ;;  %v734_v2 = vadd.f32 -0.1, %v714_v38 }
  0xa3   : > { %v1273_v31 = vpop.eup %1272  ;;  %1298 = vrcp.f32 %v671_v52  ;;  %v717_v17 = vmul.f32 1.2, %v1271_v33  ;;  %v735_v48 = vadd.f32 -0.1, %v715_v57  ;;  %v753_v56 = vmax.f32 %v733_v7, 0.0 }
  0xa4   : > { %v1275_v41 = vpop.eup %1274  ;;  %1300 = vrcp.f32 %v672_v50  ;;  %v718_v43 = vmul.f32 1.2, %v1273_v31  ;;  %v736_v9 = vadd.f32 -0.1, %v716_v23  ;;  %v754_v18 = vmax.f32 %v734_v2, 0.0 }
  0xa5   : > { %v1277_v59 = vpop.eup %1276  ;;  %v719_v36 = vmul.f32 1.2, %v1275_v41  ;;  %v737_v61 = vadd.f32 -0.1, %v717_v17  ;;  %v755_v10 = vmax.f32 %v735_v48, 0.0  ;;  %v773_v5 = vmin.f32 %v753_v56, 1.0 }
  0xa6   : > { %v1279_v42 = vpop.eup %1278  ;;  %v720_v45 = vmul.f32 1.2, %v1277_v59  ;;  %v738_v62 = vadd.f32 -0.1, %v718_v43  ;;  %v756_v40 = vmax.f32 %v736_v9, 0.0  ;;  %v774_v37 = vmin.f32 %v754_v18, 1.0 }
  0xa7   : > { %v1281_v35 = vpop.eup %1280  ;;  %v721_v1 = vmul.f32 1.2, %v1279_v42  ;;  %v739_v46 = vadd.f32 -0.1, %v719_v36  ;;  %v757_v16 = vmax.f32 %v737_v61, 0.0  ;;  %v775_v58 = vmin.f32 %v755_v10, 1.0 }
  0xa8   : > { %v1283_v32 = vpop.eup %1282  ;;  %v722_v3 = vmul.f32 1.2, %v1281_v35  ;;  %v740_v51 = vadd.f32 -0.1, %v720_v45  ;;  %v758_v26 = vmax.f32 %v738_v62, 0.0  ;;  %v776_v11 = vmin.f32 %v756_v40, 1.0 }
  0xa9   : > { %v1285_v20 = vpop.eup %1284  ;;  %v723_v21 = vmul.f32 1.2, %v1283_v32  ;;  %v741_v29 = vadd.f32 -0.1, %v721_v1  ;;  %v759_v55 = vmax.f32 %v739_v46, 0.0  ;;  %v777_v39 = vmin.f32 %v757_v16, 1.0 }
  0xaa   : > { %v1287_v27 = vpop.eup %1286  ;;  %v724_v49 = vmul.f32 1.2, %v1285_v20  ;;  %v742_v53 = vadd.f32 -0.1, %v722_v3  ;;  %v760_v34 = vmax.f32 %v740_v51, 0.0  ;;  %v778_v47 = vmin.f32 %v758_v26, 1.0 }
  0xab   : > { %v1289_v44 = vpop.eup %1288  ;;  %v725_v19 = vmul.f32 1.2, %v1287_v27  ;;  %v743_v30 = vadd.f32 -0.1, %v723_v21  ;;  %v761_v52 = vmax.f32 %v741_v29, 0.0  ;;  %v779_v60 = vmin.f32 %v759_v55, 1.0 }
  0xac   : > { %v1291_v13 = vpop.eup %1290  ;;  %v726_v0 = vmul.f32 1.2, %v1289_v44  ;;  %v744_v6 = vadd.f32 -0.1, %v724_v49  ;;  %v762_v4 = vmax.f32 %v742_v53, 0.0  ;;  %v780_v33 = vmin.f32 %v760_v34, 1.0 }
  0xad   : > { %v1293_v28 = vpop.eup %1292  ;;  %v727_v25 = vmul.f32 1.2, %v1291_v13  ;;  %v745_v24 = vadd.f32 -0.1, %v725_v19  ;;  %v763_v57 = vmax.f32 %v743_v30, 0.0  ;;  %v793_v23 = vadd.f32 %v775_v58, %v773_v5  ;;  %v813_v58 = vld [vmem:[%s2111_s1] sm:$0xff] }
  0xae   : > { %v1295_v8 = vpop.eup %1294  ;;  %v728_v63 = vmul.f32 1.2, %v1293_v28  ;;  %v746_v14 = vadd.f32 -0.1, %v726_v0  ;;  %v764_v43 = vmax.f32 %v744_v6, 0.0  ;;  %v802_v59 = vadd.f32 %v776_v11, %v774_v37 }
  0xaf   : > { %v1297_v12 = vpop.eup %1296  ;;  %v729_v22 = vmul.f32 1.2, %v1295_v8  ;;  %v747_v31 = vadd.f32 -0.1, %v727_v25  ;;  %v765_v7 = vmax.f32 %v745_v24, 0.0  ;;  %v781_v42 = vmin.f32 %v761_v52, 1.0 }
  0xb0   : > { %v1299_v54 = vpop.eup %1298  ;;  %v730_v50 = vmul.f32 1.2, %v1297_v12  ;;  %v748_v17 = vadd.f32 -0.1, %v728_v63  ;;  %v794_v45 = vadd.f32 %v793_v23, %v777_v39  ;;  %v766_v35 = vmax.f32 %v746_v14, 0.0 }
  0xb1   : > { %v1301_v15 = vpop.eup %1300  ;;  %v731_v38 = vmul.f32 1.2, %v1299_v54  ;;  %v749_v36 = vadd.f32 -0.1, %v729_v22  ;;  %v782_v48 = vmin.f32 %v762_v4, 1.0  ;;  %v803_v9 = vadd.f32 %v802_v59, %v778_v47  ;;  %v814_v54 = vld [vmem:[%s2111_s1 + $0x8] sm:$0xff] }
  0xb2   : > { %v732_v41 = vmul.f32 1.2, %v1301_v15  ;;  %v750_v2 = vadd.f32 -0.1, %v730_v50  ;;  %v767_v61 = vmax.f32 %v747_v31, 0.0  ;;  %v783_v62 = vmin.f32 %v763_v57, 1.0 }
  0xb3   : > { %v751_v32 = vadd.f32 -0.1, %v731_v38  ;;  %v795_v20 = vadd.f32 %v794_v45, %v779_v60  ;;  %v768_v46 = vmax.f32 %v748_v17, 0.0  ;;  %v784_v56 = vmin.f32 %v764_v43, 1.0 }
  0xb4   : > { %v752_v1 = vadd.f32 -0.1, %v732_v41  ;;  %v804_v27 = vadd.f32 %v803_v9, %v780_v33  ;;  %v769_v3 = vmax.f32 %v749_v36, 0.0  ;;  %v785_v51 = vmin.f32 %v765_v7, 1.0 }
  0xb5   : > { %v796_v18 = vadd.f32 %v795_v20, %v781_v42  ;;  %v770_v44 = vmax.f32 %v750_v2, 0.0  ;;  %v786_v21 = vmin.f32 %v766_v35, 1.0  ;;  %v771_v40 = vmax.f32 %v751_v32, 0.0 }
  0xb6   : > { %v805_v10 = vadd.f32 %v804_v27, %v782_v48  ;;  %v787_v13 = vmin.f32 %v767_v61, 1.0  ;;  %v772_v16 = vmax.f32 %v752_v1, 0.0  ;;  %v788_v26 = vmin.f32 %v768_v46, 1.0 }
  0xb7   : > { %v797_v49 = vadd.f32 %v796_v18, %v783_v62  ;;  %v789_v19 = vmin.f32 %v769_v3, 1.0  ;;  %v790_v55 = vmin.f32 %v770_v44, 1.0  ;;  %v791_v8 = vmin.f32 %v771_v40, 1.0 }
  0xb8   : > { %v806_v28 = vadd.f32 %v805_v10, %v784_v56  ;;  %v792_v53 = vmin.f32 %v772_v16, 1.0 }
  0xb9   : > { %v798_v29 = vadd.f32 %v797_v49, %v785_v51 }
  0xba   : > { %v807_v5 = vadd.f32 %v806_v28, %v786_v21 }
  0xbb   : > { %v799_v0 = vadd.f32 %v798_v29, %v787_v13 }
  0xbc   : > { %v808_v34 = vadd.f32 %v807_v5, %v788_v26 }
  0xbd   : > { %v800_v37 = vadd.f32 %v799_v0, %v789_v19 }
  0xbe   : > { %v809_v12 = vadd.f32 %v808_v34, %v790_v55 }
  0xbf   : > { %v801_v25 = vadd.f32 %v800_v37, %v791_v8 }
  0xc0   : > { %v810_v30 = vadd.f32 %v809_v12, %v792_v53 }
  0xc1   : > { %v811_v11 = vmul.f32 0.1, %v801_v25 }
  0xc2   : > { %v812_v63 = vmul.f32 0.1, %v810_v30 }
  0xc3   : > { %v815_v6 = vmul.f32 %v813_v58, %v811_v11 }
  0xc4   : > { %v816_v39 = vmul.f32 %v814_v54, %v812_v63 }
  0xc5   : > { %817 = vst [vmem:[#allocation2] sm:$0xff] %v815_v6 }
  0xc6   : > { %818 = vst [vmem:[#allocation2 + $0x8] sm:$0xff] %v816_v39 }
  0xc7 PF: > { %v1429_v15 = vmov 0.0   ;;  %vm1430_vm2 = vmmov 0   ;;  %v819_v24 = vld [vmem:[%s1576_s30] sm:$0xff]  ;;  %vm829_vm3 = vcmask 130048   ;;  %s1043_s22 = sshll.u32 %s1569_s17, 7  ;;  %s920_s7 = sshll.u32 %s256_s6, 4  ;;  %s921_s7 = int_to_ptr.vmem [resolvable:$true] %s920_s7 }
  0xc8   : > { %1049 = vmatprep.subr.mxu0 %v1429_v15  ;;  %1053 = vmatprep.mubr.msk.f32.mxu0 %vm1430_vm2, %v1429_v15  ;;  %v1039_v52 = vld [vmem:[%s2114_s4] ss:$0 sm:$0xff]  ;;  %s2060_s13 = scalar_lea.hbm %s2115_s5, %s1043_s22  ;;  %s905_s30 = scalar_lea.sflag [#allocation5], %s254_s11 }
  0xc9   : > { %s1328_s27 = scalar_lea.vmem %s921_s7, 128  ;;  %s1431_s17 = smov [#allocation6]  }
  0xca   : > { %p1329_p13 = scmp.ne.s32.totalorder %s921_s7, %s1328_s27  ;;  %s1332_s26 = sshll.u32 %s1431_s17, 4  ;;  %s1333_s26 = int_to_ptr.vmem [resolvable:$false] %s1332_s26 }
  0xcb   : > { %s1334_s14 = scalar_lea.vmem %s1333_s26, 256  ;;  %p1335_p2 = scmp.lt.s32.totalorder %s921_s7, %s1333_s26 }
  0xcc   : > { %v820_v22 = vld [vmem:[#allocation2] sm:$0xff]  ;;  %p1330_p0 = pnand %p1329_p13, %p1516_p5  ;;  %p1336_p3 = scmp.lt.s32.totalorder %s1334_s14, %s1328_s27 }
  0xcd   : > { %v821_v47 = vld [vmem:[#allocation2 + $0x8] sm:$0xff] }
  0xce   : > { %1050 = vmatpush3.msra.mxu0 %v821_v47  ;;  %p1331_p1 = pneg %p1330_p0  ;;  %p1337_p4 = por %p1336_p3, %p1335_p2 }
  0xcf   : > { %1051 = vmatprep.subr.mxu0 %v1429_v15 }
  0xd0   : > { %1052 = vmatpush3.msra.mxu0 %v820_v22  ;;  %p1338_p6 = pnand %p1337_p4, %p1331_p1 }
  0xd1   : > { %1054 = vmatmul.mubr.msk.f32.vlgmr.msra.gmra.mxu0 %vm829_vm3, %v819_v24 }
 0x191   : > { %v899_v60 = vpop.f32.mrf.mxu0 }
 0x192   : > { %v900_v50 = vadd.f32 %v1039_v52, %v899_v60 }
 0x193   : > { %v1055_v14 = vpop.f32.mrf.mxu0 }
 0x194   : > { %903 = vst [vmem:[%s256_s6] sm:$0xff] %v900_v50 }
 0x195   : > { %1341 = shalt.err (!%p1338_p6)
}
 0x196   : > { %s1342_s16 = scalar_lea.hbm %s2060_s13, 128  ;;  %s1346_s21 = scalar_lea.hbm %s2115_s5, 512 }
 0x197   : > { %p1343_p8 = scmp.ne.s32.totalorder %s2060_s13, %s1342_s16  ;;  %p1347_p10 = scmp.lt.s32.totalorder %s2060_s13, %s2115_s5 }
 0x198   : > { %p1348_p12 = scmp.lt.s32.totalorder %s1346_s21, %s1342_s16 }
 0x199   : > { %p1344_p9 = pnand %p1343_p8, %p1516_p5 }
 0x19a   : > { %p1349_p13 = por %p1348_p12, %p1347_p10 }
 0x19b   : > { %p1345_p11 = pneg %p1344_p9 }
 0x19d   : > { %p1350_p0 = pnand %p1349_p13, %p1345_p11 }
 0x19f   : > { %1353 = shalt.err (!%p1350_p0)
}
 0x1a0   : > { %1060 = dma.vmem_to_hbm [thread:$0]  (%p1516_p5), %s921_s7, 128, %s2060_s13, %s905_s30  }
 0x1a1 PF: > { %p1072_p1 = scmp.ge.s32.totalorder %s1424_s25, 2  ;;  %s932_s12 = sand.u32 1, %s1396_s18  }
 0x1a2   : > { %s933_s27 = scalar_lea.sflag [#allocation5], %s932_s12 }
 0x1a3   : > { %p1067_p2 = pnand %p1072_p1, %p1522_p7 }
 0x1a5   : > { %p1068_p3 = pneg %p1067_p2 }
 0x1a7   : > { %1391 = dma.done.wait (%p1068_p3), %s933_s27, 128  }
 0x1a8   : > { %1393 = vsyncadd (%p1068_p3), %s933_s27, 4294967168  ;;  %s19_s25 = sadd.s32 1, %s1424_s25   ;;  %s2226_s18 = smov %s1400_s19 }
 0x1a9   : > { %p16_p4 = scmp.ge.s32.totalorder %s19_s25, 6   ;;  %s2227_s19 = smov %s1404_s20 }
 0x1aa   : > { %s2228_s20 = smov %s1541_s15  ;;  %s2229_s21 = smov %s1416_s23 }
 0x1ab   : > { %s2230_s22 = smov %s1420_s24  ;;  %s2231_s23 = smov %s2234_s28 }
 0x1ac   : > { %s2232_s24 = smov %s2238_s29  ;;  %18 = sbr.rel (!%p16_p4) target bundleno = 6 (0x6), region = 84 }
 0x1b1   :  { %938 = vsyncpa [#allocation4], 1 }
 0x1b2   :  { %940 = vsyncpa [#allocation4 + $0x1], 1 }
 0x1b3   :  { %941 = vsyncpa [#allocation5], 1 }
 0x1b4   :  { %943 = vsyncpa [#allocation5 + $0x1], 1 }

</bundles_post_ra>
